<compile_context>
chip_gen: v6e
topology: v6e:2x2x1
jax: 0.10.0
libtpu: 0.0.40
codegen_flags: <defaults>
</compile_context>

<pallas_src>
import math
from functools import partial

import jax
import jax.numpy as jnp
from jax.experimental import pallas as pl
from jax.experimental.pallas import tpu as pltpu

LN_EPS = 1e-5  # PyTorch nn.LayerNorm default
_MiB = 1024 * 1024


def _seg_merging_kernel(x_ref, w_ref, wsum_ref, b_ref, o_ref, *, dot_precision):
    # x_ref:    (tm, Dw)        merged-segment rows, native dtype
    # w_ref:    (Dw, d_model)   LayerNorm-gamma-folded linear weight (x @ W layout)
    # wsum_ref: (1, d_model)    f32 column sums of the folded weight
    # b_ref:    (1, d_model)    f32 folded bias (beta @ W + b)
    # o_ref:    (tm, d_model)
    x = x_ref[...]

    # Two-pass LayerNorm statistics in f32 (biased variance, like torch).
    xf = x.astype(jnp.float32)
    mean = jnp.mean(xf, axis=-1, keepdims=True)
    centered = xf - mean
    var = jnp.mean(centered * centered, axis=-1, keepdims=True)
    inv = jax.lax.rsqrt(var + LN_EPS)  # EUP path

    # MXU consumes x in its native dtype; the per-row normalization is applied after the
    # matmul:  norm(x) @ W' = inv * ((x - mean) @ W') = inv * (x @ W' - mean * colsum(W'))
    acc = jnp.dot(x, w_ref[...], preferred_element_type=jnp.float32,
                  precision=dot_precision)
    out = (acc - mean * wsum_ref[...]) * inv + b_ref[...]
    o_ref[...] = out.astype(o_ref.dtype)


def _default_vmem_limit_bytes():
    # Leave ~32 MiB headroom below physical VMEM: 128 MiB parts (v5e/v6e) -> 96 MiB budget,
    # 64 MiB parts (v7x per TensorCore) -> 32 MiB.
    try:
        cap = int(pltpu.get_tpu_info().vmem_capacity_bytes)
    except Exception:
        cap = 64 * _MiB
    return int(max(32 * _MiB, cap // 2, cap - 32 * _MiB))


def _round_down(v, m):
    return max(m, (v // m) * m)


def _round_up(v, m):
    return -(-v // m) * m


def _pick_tm(M, Dw, d_model, in_itemsize, w_itemsize, vmem_limit_bytes):
    """Largest aligned row tile that fits VMEM, preferring an even grid-step count."""
    sub = 8 if in_itemsize >= 4 else max(8, 32 // in_itemsize)
    if M <= sub:
        return M

    # Resident operands (charged as double-buffered in case single-buffering is refused).
    resident = 2 * (Dw * d_model * w_itemsize + 2 * d_model * 4)
    budget = vmem_limit_bytes - resident - 2 * _MiB          # compiler-scratch headroom
    budget = max(budget, vmem_limit_bytes // 4)
    per_row = (2 * Dw * in_itemsize          # double-buffered input block
               + 2 * d_model * in_itemsize   # double-buffered output block
               + 2 * Dw * 4)                 # f32 LN temporaries (xf, centered)
    tm = min(int(budget // per_row), 1024)
    if tm >= M:
        return M                             # single full block (always legal)

    align = 128 if tm >= 128 else sub
    tm = _round_down(tm, align)

    # Prefer an even number of grid steps so the "parallel" axis splits evenly across
    # v7x's two TensorCores and the ragged tail is one small block among many.
    steps = -(-M // tm)
    if steps > 1 and steps % 2 == 1:
        tm_even = _round_up(-(-M // (steps + 1)), align)
        if tm_even >= align and (-(-M // tm_even)) % 2 == 0:
            tm = tm_even
    return tm


def _resident_spec(shape, single_buffer):
    if single_buffer:
        # Constant-index resident operand: one buffer is enough -> more VMEM for tm.
        return pl.BlockSpec(shape, lambda i: (0, 0), pipeline_mode=pl.Buffered(1))
    return pl.BlockSpec(shape, lambda i: (0, 0))


def _build_call(kernel, M, Dw, d_model, tm, out_dtype, vmem_limit_bytes, single_buffer):
    # NOTE: if production d_model < 128 the output lane dim is sparse (masked stores, low
    # MXU N-occupancy); fuse with the next projection or batch outputs if that matters.
    return pl.pallas_call(
        kernel,
        out_shape=jax.ShapeDtypeStruct((M, d_model), out_dtype),
        grid_spec=pltpu.PrefetchScalarGridSpec(
            num_scalar_prefetch=0,
            grid=(pl.cdiv(M, tm),),   # partial tail block clipped by Pallas (row-independent)
            in_specs=[
                pl.BlockSpec((tm, Dw), lambda i: (i, 0)),        # merged-segment rows
                _resident_spec((Dw, d_model), single_buffer),    # folded weight (resident)
                _resident_spec((1, d_model), single_buffer),     # folded-weight colsum (f32)
                _resident_spec((1, d_model), single_buffer),     # folded bias (f32)
            ],
            out_specs=pl.BlockSpec((tm, d_model), lambda i: (i, 0)),
        ),
        compiler_params=pltpu.CompilerParams(
            dimension_semantics=("parallel",),                   # independent row blocks
            vmem_limit_bytes=vmem_limit_bytes),
    )


def seg_merging_forward(x, params, win_size, *, tm=None, dot_precision="auto",
                        vmem_limit_bytes=None):
    """x: (B, ts_d, L, d_model) -> (B, ts_d, ceil(L / win_size), d_model)."""
    gamma, beta, w, b = params  # gamma/beta: (Dw,); w: (Dw, d_model) [= torch weight.T]; b: (d_model,)
    B, ts_d, seg_num, d_model = x.shape
    Dw = win_size * d_model

    # Replicate-pad trailing segments so seg_num is a multiple of win_size (as in PyTorch).
    pad_num = seg_num % win_size
    if pad_num != 0:
        pad_num = win_size - pad_num
        # TODO(synk): this concat rewrites x in HBM once for ragged seg_num; folding the
        # replicate-pad into a scalar-prefetched / pl.Element row map would remove the copy.
        x = jnp.concatenate([x, x[:, :, -pad_num:, :]], axis=2)
    seg_new = x.shape[2] // win_size
    M = B * ts_d * seg_new

    # Merging win_size adjacent segments == contiguous reshape (zero-copy wrapper path).
    x2 = x.reshape(M, Dw)

    # Fold the LayerNorm affine into the linear (exact):
    #   (norm(x)*gamma + beta) @ W + b == norm(x) @ (gamma[:,None]*W) + (beta @ W + b)
    w32 = w.astype(jnp.float32)
    w_f = (gamma.astype(jnp.float32)[:, None] * w32).astype(w.dtype)           # (Dw, d_model)
    b_f = (beta.astype(jnp.float32) @ w32
           + b.astype(jnp.float32)).reshape(1, d_model)                         # (1, d_model) f32
    # Column sums of the weight the MXU actually sees (post-cast), for the mean shift.
    wsum = jnp.sum(w_f.astype(jnp.float32), axis=0, keepdims=True)              # (1, d_model) f32

    if dot_precision == "auto":
        # HIGHEST = torch-parity default for f32 params; pass jax.lax.Precision.DEFAULT or
        # HIGH for a cheaper MXU path when tolerance allows (biggest win on v5e).  bf16
        # params take the native single-pass path.
        dot_precision = (jax.lax.Precision.HIGHEST
                         if w_f.dtype == jnp.float32 else None)

    if vmem_limit_bytes is None:
        vmem_limit_bytes = _default_vmem_limit_bytes()
    in_itemsize = jnp.dtype(x2.dtype).itemsize
    w_itemsize = jnp.dtype(w_f.dtype).itemsize
    if tm is None:
        tm = _pick_tm(M, Dw, d_model, in_itemsize, w_itemsize, vmem_limit_bytes)
    tm = min(tm, M)

    kernel = partial(_seg_merging_kernel, dot_precision=dot_precision)

    out = None
    for single_buffer in (True, False):
        try:
            call = _build_call(kernel, M, Dw, d_model, tm, x.dtype,
                               vmem_limit_bytes, single_buffer)
            out = call(x2, w_f, wsum, b_f)
            break
        except Exception:
            # pipeline_mode=pl.Buffered(1) not supported on this JAX/Pallas version ->
            # retry with default (double-buffered) resident specs.
            if not single_buffer:
                raise
    return out.reshape(B, ts_d, seg_new, d_model)


def _reference_forward(x, params, win_size):
    """Pure-JAX (f32) reference mirroring the PyTorch forward."""
    gamma, beta, w, b = [p.astype(jnp.float32) for p in params]
    x = x.astype(jnp.float32)
    B, ts_d, seg_num, d_model = x.shape
    pad_num = seg_num % win_size
    if pad_num != 0:
        pad_num = win_size - pad_num
        x = jnp.concatenate([x, x[:, :, -pad_num:, :]], axis=2)
    segs = [x[:, :, i::win_size, :] for i in range(win_size)]
    xm = jnp.concatenate(segs, axis=-1)
    mean = jnp.mean(xm, axis=-1, keepdims=True)
    var = jnp.mean((xm - mean) ** 2, axis=-1, keepdims=True)
    y = (xm - mean) / jnp.sqrt(var + LN_EPS) * gamma + beta
    return jnp.einsum("btld,de->btle", y, w,
                      precision=jax.lax.Precision.HIGHEST) + b


def init_params(key, d_model, win_size, dtype=jnp.float32):
    Dw = win_size * d_model
    k1, k2, k3, k4 = jax.random.split(key, 4)
    # nn.Linear(Dw, d_model): U(-1/sqrt(Dw), 1/sqrt(Dw)); stored as (Dw, d_model) for x @ W.
    bound = 1.0 / math.sqrt(Dw)
    w = jax.random.uniform(k1, (Dw, d_model), jnp.float32, -bound, bound).astype(dtype)
    b = jax.random.uniform(k2, (d_model,), jnp.float32, -bound, bound).astype(dtype)
    # Perturb gamma / beta so the affine (and its fold into W/b) is actually exercised.
    gamma = (1.0 + 0.1 * jax.random.normal(k3, (Dw,), jnp.float32)).astype(dtype)
    beta = (0.1 * jax.random.normal(k4, (Dw,), jnp.float32)).astype(dtype)
    return gamma, beta, w, b


if __name__ == "__main__":
    root = jax.random.PRNGKey(0)

    configs = [
        # (B, ts_d, seg_num, d_model, win, dtype,      tm,   precision,                   tol)
        (2, 4, 8, 32, 2, jnp.float32, None, "auto", 5e-3),   # aligned, zero-copy wrapper path
        (2, 4, 9, 32, 2, jnp.float32, 16, "auto", 5e-3),     # ragged seg_num + multi-block + partial tail
        (2, 2, 6, 16, 4, jnp.bfloat16, None, "auto", 5e-2),  # bf16 end-to-end (native MXU dtype)
        (2, 4, 8, 32, 2, jnp.float32, 16,
         jax.lax.Precision.DEFAULT, 5e-2),                   # fast f32 MXU path (v5e-friendly)
    ]

    for cfg_i, (B, ts_d, seg_num, d_model, win_size, dtype, tm, prec, tol) in enumerate(configs):
        kx, kp = jax.random.split(jax.random.fold_in(root, cfg_i))
        x = jax.random.normal(kx, (B, ts_d, seg_num, d_model), jnp.float32).astype(dtype)
        params = init_params(kp, d_model, win_size, dtype=dtype)

        out = jax.block_until_ready(
            seg_merging_forward(x, params, win_size, tm=tm, dot_precision=prec))
        ref = _reference_forward(x, params, win_size)

        seg_out = -(-seg_num // win_size)
        assert out.shape == (B, ts_d, seg_out, d_model), (cfg_i, out.shape)
        err = float(jnp.max(jnp.abs(out.astype(jnp.float32) - ref)))
        assert err < tol, (cfg_i, err)

    print("KERNEL_OK")
</pallas_src>

<mosaic_0001>
module attributes {stable_mosaic.version = 11 : i64} {
  func.func @_seg_merging_kernel(%arg0: i32, %arg1: memref<32x64xf32, #tpu.memory_space<vmem>>, %arg2: memref<64x32xf32, #tpu.memory_space<vmem>>, %arg3: memref<1x32xf32, #tpu.memory_space<vmem>>, %arg4: memref<1x32xf32, #tpu.memory_space<vmem>>, %arg5: memref<32x32xf32, #tpu.memory_space<vmem>>) attributes {dimension_semantics = [#tpu.dimension_semantics<parallel>], iteration_bounds = array<i64: 1>, scalar_prefetch = 0 : i64, scratch_operands = 0 : i64, tpu.core_type = #tpu.core_type<tc>, window_params = [{transform_indices = @transform_0, window_bounds = array<i64: 32, 64>}, {pipeline_mode = #tpu.pipeline_mode<synchronous>, transform_indices = @transform_1, window_bounds = array<i64: 64, 32>}, {pipeline_mode = #tpu.pipeline_mode<synchronous>, transform_indices = @transform_2, window_bounds = array<i64: 1, 32>}, {pipeline_mode = #tpu.pipeline_mode<synchronous>, transform_indices = @transform_3, window_bounds = array<i64: 1, 32>}, {transform_indices = @transform_4, window_bounds = array<i64: 32, 32>}]} {
    %c0 = arith.constant 0 : index
    %c0_0 = arith.constant 0 : index
    %0 = vector.load %arg1[%c0, %c0_0] : memref<32x64xf32, #tpu.memory_space<vmem>>, vector<32x64xf32>
    %cst = arith.constant dense<0.000000e+00> : vector<32xf32>
    %1 = vector.multi_reduction <add>, %0, %cst [1] : vector<32x64xf32> to vector<32xf32>
    %2 = vector.shape_cast %1 : vector<32xf32> to vector<32x1xf32>
    %cst_1 = arith.constant 6.400000e+01 : f32
    %3 = vector.broadcast %cst_1 : f32 to vector<32x1xf32>
    %4 = arith.divf %2, %3 : vector<32x1xf32>
    %5 = vector.broadcast %4 : vector<32x1xf32> to vector<32x64xf32>
    %6 = arith.subf %0, %5 : vector<32x64xf32>
    %7 = arith.mulf %6, %6 : vector<32x64xf32>
    %cst_2 = arith.constant dense<0.000000e+00> : vector<32xf32>
    %8 = vector.multi_reduction <add>, %7, %cst_2 [1] : vector<32x64xf32> to vector<32xf32>
    %9 = vector.shape_cast %8 : vector<32xf32> to vector<32x1xf32>
    %cst_3 = arith.constant 6.400000e+01 : f32
    %10 = vector.broadcast %cst_3 : f32 to vector<32x1xf32>
    %11 = arith.divf %9, %10 : vector<32x1xf32>
    %cst_4 = arith.constant 9.99999974E-6 : f32
    %12 = vector.broadcast %cst_4 : f32 to vector<32x1xf32>
    %13 = arith.addf %11, %12 : vector<32x1xf32>
    %14 = math.rsqrt %13 : vector<32x1xf32>
    %c0_5 = arith.constant 0 : index
    %c0_6 = arith.constant 0 : index
    %15 = vector.load %arg2[%c0_5, %c0_6] : memref<64x32xf32, #tpu.memory_space<vmem>>, vector<64x32xf32>
    %cst_7 = arith.constant dense<0.000000e+00> : vector<32x32xf32>
    %16 = tpu.matmul %0, %15, %cst_7 {dimension_numbers = #tpu.dot_dimension_numbers<[1], [0], [0], [1], [0, 0, 1, 1], [], []>, precision = #tpu.contract_precision<fp32>} : vector<32x64xf32>, vector<64x32xf32>, vector<32x32xf32> -> vector<32x32xf32>
    %c0_8 = arith.constant 0 : index
    %c0_9 = arith.constant 0 : index
    %17 = vector.load %arg3[%c0_8, %c0_9] : memref<1x32xf32, #tpu.memory_space<vmem>>, vector<1x32xf32>
    %18 = vector.broadcast %4 : vector<32x1xf32> to vector<32x32xf32>
    %19 = vector.broadcast %17 : vector<1x32xf32> to vector<32x32xf32>
    %20 = arith.mulf %18, %19 : vector<32x32xf32>
    %21 = arith.subf %16, %20 : vector<32x32xf32>
    %22 = vector.broadcast %14 : vector<32x1xf32> to vector<32x32xf32>
    %23 = arith.mulf %21, %22 : vector<32x32xf32>
    %c0_10 = arith.constant 0 : index
    %c0_11 = arith.constant 0 : index
    %24 = vector.load %arg4[%c0_10, %c0_11] : memref<1x32xf32, #tpu.memory_space<vmem>>, vector<1x32xf32>
    %25 = vector.broadcast %24 : vector<1x32xf32> to vector<32x32xf32>
    %26 = arith.addf %23, %25 : vector<32x32xf32>
    %c0_12 = arith.constant 0 : index
    %c0_13 = arith.constant 0 : index
    %27 = vector.load %arg5[%c0_12, %c0_13] : memref<32x32xf32, #tpu.memory_space<vmem>>, vector<32x32xf32>
    tpu.vector_store %arg5[%c0_12, %c0_13], %26 {strides = array<i32>} : memref<32x32xf32, #tpu.memory_space<vmem>>, vector<32x32xf32>,
    return
  }
  func.func @transform_0(%arg0: i32) -> (i32, i32) {
    %c0_i32 = arith.constant 0 : i32
    %c0_i32_0 = arith.constant 0 : i32
    return %arg0, %c0_i32 : i32, i32
  }
  func.func @transform_1(%arg0: i32) -> (i32, i32) {
    %c0_i32 = arith.constant 0 : i32
    %c0_i32_0 = arith.constant 0 : i32
    %c0_i32_1 = arith.constant 0 : i32
    return %c0_i32, %c0_i32_0 : i32, i32
  }
  func.func @transform_2(%arg0: i32) -> (i32, i32) {
    %c0_i32 = arith.constant 0 : i32
    %c0_i32_0 = arith.constant 0 : i32
    %c0_i32_1 = arith.constant 0 : i32
    return %c0_i32, %c0_i32_0 : i32, i32
  }
  func.func @transform_3(%arg0: i32) -> (i32, i32) {
    %c0_i32 = arith.constant 0 : i32
    %c0_i32_0 = arith.constant 0 : i32
    %c0_i32_1 = arith.constant 0 : i32
    return %c0_i32, %c0_i32_0 : i32, i32
  }
  func.func @transform_4(%arg0: i32) -> (i32, i32) {
    %c0_i32 = arith.constant 0 : i32
    %c0_i32_0 = arith.constant 0 : i32
    return %arg0, %c0_i32 : i32, i32
  }
}

module attributes {stable_mosaic.version = 11 : i64} {
  func.func @_seg_merging_kernel(%arg0: i32, %arg1: memref<32x64xf32, #tpu.memory_space<vmem>>, %arg2: memref<64x32xf32, #tpu.memory_space<vmem>>, %arg3: memref<1x32xf32, #tpu.memory_space<vmem>>, %arg4: memref<1x32xf32, #tpu.memory_space<vmem>>, %arg5: memref<32x32xf32, #tpu.memory_space<vmem>>) attributes {dimension_semantics = [#tpu.dimension_semantics<parallel>], iteration_bounds = array<i64: 1>, scalar_prefetch = 0 : i64, scratch_operands = 0 : i64, tpu.core_type = #tpu.core_type<tc>, window_params = [{transform_indices = @transform_0, window_bounds = array<i64: 32, 64>}, {pipeline_mode = #tpu.pipeline_mode<synchronous>, transform_indices = @transform_1, window_bounds = array<i64: 64, 32>}, {pipeline_mode = #tpu.pipeline_mode<synchronous>, transform_indices = @transform_2, window_bounds = array<i64: 1, 32>}, {pipeline_mode = #tpu.pipeline_mode<synchronous>, transform_indices = @transform_3, window_bounds = array<i64: 1, 32>}, {transform_indices = @transform_4, window_bounds = array<i64: 32, 32>}]} {
    %c0 = arith.constant 0 : index
    %c0_0 = arith.constant 0 : index
    %0 = vector.load %arg1[%c0, %c0_0] : memref<32x64xf32, #tpu.memory_space<vmem>>, vector<32x64xf32>
    %cst = arith.constant dense<0.000000e+00> : vector<32xf32>
    %1 = vector.multi_reduction <add>, %0, %cst [1] : vector<32x64xf32> to vector<32xf32>
    %2 = vector.shape_cast %1 : vector<32xf32> to vector<32x1xf32>
    %cst_1 = arith.constant 6.400000e+01 : f32
    %3 = vector.broadcast %cst_1 : f32 to vector<32x1xf32>
    %4 = arith.divf %2, %3 : vector<32x1xf32>
    %5 = vector.broadcast %4 : vector<32x1xf32> to vector<32x64xf32>
    %6 = arith.subf %0, %5 : vector<32x64xf32>
    %7 = arith.mulf %6, %6 : vector<32x64xf32>
    %cst_2 = arith.constant dense<0.000000e+00> : vector<32xf32>
    %8 = vector.multi_reduction <add>, %7, %cst_2 [1] : vector<32x64xf32> to vector<32xf32>
    %9 = vector.shape_cast %8 : vector<32xf32> to vector<32x1xf32>
    %cst_3 = arith.constant 6.400000e+01 : f32
    %10 = vector.broadcast %cst_3 : f32 to vector<32x1xf32>
    %11 = arith.divf %9, %10 : vector<32x1xf32>
    %cst_4 = arith.constant 9.99999974E-6 : f32
    %12 = vector.broadcast %cst_4 : f32 to vector<32x1xf32>
    %13 = arith.addf %11, %12 : vector<32x1xf32>
    %14 = math.rsqrt %13 : vector<32x1xf32>
    %c0_5 = arith.constant 0 : index
    %c0_6 = arith.constant 0 : index
    %15 = vector.load %arg2[%c0_5, %c0_6] : memref<64x32xf32, #tpu.memory_space<vmem>>, vector<64x32xf32>
    %cst_7 = arith.constant dense<0.000000e+00> : vector<32x32xf32>
    %16 = tpu.matmul %0, %15, %cst_7 {dimension_numbers = #tpu.dot_dimension_numbers<[1], [0], [0], [1], [0, 0, 1, 1], [], []>, precision = #tpu.contract_precision<fp32>} : vector<32x64xf32>, vector<64x32xf32>, vector<32x32xf32> -> vector<32x32xf32>
    %c0_8 = arith.constant 0 : index
    %c0_9 = arith.constant 0 : index
    %17 = vector.load %arg3[%c0_8, %c0_9] : memref<1x32xf32, #tpu.memory_space<vmem>>, vector<1x32xf32>
    %18 = vector.broadcast %4 : vector<32x1xf32> to vector<32x32xf32>
    %19 = vector.broadcast %17 : vector<1x32xf32> to vector<32x32xf32>
    %20 = arith.mulf %18, %19 : vector<32x32xf32>
    %21 = arith.subf %16, %20 : vector<32x32xf32>
    %22 = vector.broadcast %14 : vector<32x1xf32> to vector<32x32xf32>
    %23 = arith.mulf %21, %22 : vector<32x32xf32>
    %c0_10 = arith.constant 0 : index
    %c0_11 = arith.constant 0 : index
    %24 = vector.load %arg4[%c0_10, %c0_11] : memref<1x32xf32, #tpu.memory_space<vmem>>, vector<1x32xf32>
    %25 = vector.broadcast %24 : vector<1x32xf32> to vector<32x32xf32>
    %26 = arith.addf %23, %25 : vector<32x32xf32>
    %c0_12 = arith.constant 0 : index
    %c0_13 = arith.constant 0 : index
    %27 = vector.load %arg5[%c0_12, %c0_13] : memref<32x32xf32, #tpu.memory_space<vmem>>, vector<32x32xf32>
    tpu.vector_store %arg5[%c0_12, %c0_13], %26 {strides = array<i32>} : memref<32x32xf32, #tpu.memory_space<vmem>>, vector<32x32xf32>,
    return
  }
  func.func @transform_0(%arg0: i32) -> (i32, i32) {
    %c0_i32 = arith.constant 0 : i32
    %c0_i32_0 = arith.constant 0 : i32
    return %arg0, %c0_i32 : i32, i32
  }
  func.func @transform_1(%arg0: i32) -> (i32, i32) {
    %c0_i32 = arith.constant 0 : i32
    %c0_i32_0 = arith.constant 0 : i32
    %c0_i32_1 = arith.constant 0 : i32
    return %c0_i32, %c0_i32_0 : i32, i32
  }
  func.func @transform_2(%arg0: i32) -> (i32, i32) {
    %c0_i32 = arith.constant 0 : i32
    %c0_i32_0 = arith.constant 0 : i32
    %c0_i32_1 = arith.constant 0 : i32
    return %c0_i32, %c0_i32_0 : i32, i32
  }
  func.func @transform_3(%arg0: i32) -> (i32, i32) {
    %c0_i32 = arith.constant 0 : i32
    %c0_i32_0 = arith.constant 0 : i32
    %c0_i32_1 = arith.constant 0 : i32
    return %c0_i32, %c0_i32_0 : i32, i32
  }
  func.func @transform_4(%arg0: i32) -> (i32, i32) {
    %c0_i32 = arith.constant 0 : i32
    %c0_i32_0 = arith.constant 0 : i32
    return %arg0, %c0_i32 : i32, i32
  }
}

</mosaic_0001>

<bundles_post_ra>
// kernel: tpu_custom_call.1
= control target key start
LH: loop header
LB: loop body
LE: loop exit
PB: predicated region body
PF: predicated region fallthrough
CT: control target
= control target key end

     0   :  { %vm22_vm0 = vcmask 523264   ;;  %s1393_s0 = inlined_call_operand.vmem [shape: f32[32,64], index: 0, kind: input, shape index: {}]   ;;  %s1394_s1 = inlined_call_operand.vmem [shape: f32[64,32], index: 1, kind: input, shape index: {}]   ;;  %s1395_s2 = inlined_call_operand.vmem [shape: f32[1,32], index: 2, kind: input, shape index: {}]   ;;  %s1396_s3 = inlined_call_operand.vmem [shape: f32[1,32], index: 3, kind: input, shape index: {}]   ;;  %s1397_s4 = inlined_call_operand.hbm [shape: f32[32,32], index: 4, kind: output, shape index: {}]  }
   0x1   :  { %v1079_v0 = vld [vmem:[%s1393_s0] sm:$0xff]  ;;  %v1084_v1 = vld [vmem:[%s1393_s0 + $0x10] sm:$0xff]  ;;  %v1089_v2 = vld [vmem:[%s1393_s0 + $0x8] sm:$0xff] }
   0x2   :  { %v23_v3 = vsel %vm22_vm0, %v1079_v0, 0.0  ;;  %v81_v4 = vsel %vm22_vm0, %v1079_v0, 0  ;;  %v29_v5 = vsel %vm22_vm0, %v1084_v1, 0.0  ;;  %v79_v6 = vld [vmem:[%s1394_s1 + $0x38] sm:$0xff]  ;;  %v78_v9 = vld [vmem:[%s1394_s1 + $0x30] sm:$0xff]  ;;  %v77_v10 = vld [vmem:[%s1394_s1 + $0x28] sm:$0xff] }
   0x3   :  { %v1103_v7 = vld [vmem:[%s1393_s0 + $0x18] sm:$0xff]  ;;  %v1105_v8 = vand.u32 4294901760, %v81_v4  ;;  %24 = vadd.xlane.f32.xlu0 %v23_v3  ;;  %30 = vadd.xlane.f32.xlu1 %v29_v5  ;;  %v26_v11 = vsel %vm22_vm0, %v1089_v2, 0.0  ;;  %v84_v12 = vsel %vm22_vm0, %v1089_v2, 0  ;;  %v1117_v13 = vand.u32 4294901760, %v79_v6  ;;  %v76_v14 = vld [vmem:[%s1394_s1 + $0x20] sm:$0xff] }
   0x4   :  { %v75_v15 = vld [vmem:[%s1394_s1 + $0x18] sm:$0xff]  ;;  %v32_v16 = vsel %vm22_vm0, %v1103_v7, 0.0  ;;  %v1127_v17 = vand.u32 4294901760, %v78_v9  ;;  %v1129_v18 = vand.u32 4294901760, %v77_v10  ;;  %v74_v19 = vld [vmem:[%s1394_s1 + $0x10] sm:$0xff]  ;;  %v73_v20 = vld [vmem:[%s1394_s1 + $0x8] sm:$0xff] }
   0x5   :  { %921 = vmatprep.mubr.f32.mxu1 %v1105_v8  ;;  %883 = vmatprep.subr.mxu0 %v1117_v13  ;;  %v1140_v21 = vsub.f32 %v79_v6, %v1117_v13  ;;  %v1142_v22 = vand.u32 4294901760, %v76_v14  ;;  %v1144_v23 = vand.u32 4294901760, %v75_v15  ;;  %v72_v24 = vld [vmem:[%s1394_s1] sm:$0xff] }
   0x6   :  { %9 = vsyncpa [#allocation3], 0  ;;  %v1149_v25 = vand.u32 4294901760, %v84_v12  ;;  %884 = vmatpush3.msra.mxu0 %v1117_v13  ;;  %v1153_v26 = vsub.f32 %v78_v9, %v1127_v17  ;;  %v1156_v27 = vsub.f32 %v77_v10, %v1129_v18  ;;  %v1158_v28 = vand.u32 4294901760, %v74_v19 }
   0x7   :  { %27 = vadd.xlane.f32.xlu0 %v26_v11  ;;  %33 = vadd.xlane.f32.xlu1 %v32_v16  ;;  %v1162_v29 = vand.u32 4294901760, %v1140_v21  ;;  %v1165_v30 = vsub.f32 %v76_v14, %v1142_v22  ;;  %v1168_v31 = vsub.f32 %v75_v15, %v1144_v23  ;;  %v1170_v32 = vand.u32 4294901760, %v73_v20 }
   0x8   :  { %885 = vmatprep.subr.mxu0 %v1127_v17  ;;  %v1174_v33 = vand.u32 4294901760, %v1153_v26  ;;  %v1177_v34 = vand.u32 4294901760, %v1156_v27  ;;  %v1180_v35 = vsub.f32 %v74_v19, %v1158_v28  ;;  %v1182_v36 = vand.u32 4294901760, %v72_v24 }
   0x9   :  { %886 = vmatpush3.msra.mxu0 %v1127_v17  ;;  %v225_v37 = vsub.f32 %v1140_v21, %v1162_v29  ;;  %v1188_v38 = vand.u32 4294901760, %v1165_v30  ;;  %v1191_v39 = vand.u32 4294901760, %v1168_v31  ;;  %v1194_v40 = vsub.f32 %v73_v20, %v1170_v32 }
   0xa   :  { %887 = vmatprep.subr.mxu0 %v1129_v18  ;;  %v1197_v41 = vsub.f32 %v84_v12, %v1149_v25  ;;  %v232_v42 = vsub.f32 %v1153_v26, %v1174_v33  ;;  %v239_v43 = vsub.f32 %v1156_v27, %v1177_v34  ;;  %v1205_v44 = vsub.f32 %v81_v4, %v1105_v8 }
   0xb   :  { %888 = vmatpush3.msra.mxu0 %v1129_v18  ;;  %v226_v45 = vand.u32 4294901760, %v225_v37  ;;  %v246_v46 = vsub.f32 %v1165_v30, %v1188_v38  ;;  %v1211_v47 = vand.u32 4294901760, %v1180_v35  ;;  %v87_v48 = vsel %vm22_vm0, %v1084_v1, 0 }
   0xc   :  { %889 = vmatprep.subr.mxu0 %v1142_v22  ;;  %v233_v49 = vand.u32 4294901760, %v232_v42  ;;  %v167_v50 = vand.u32 4294901760, %v1205_v44  ;;  %v240_v51 = vand.u32 4294901760, %v239_v43  ;;  %v253_v52 = vsub.f32 %v1168_v31, %v1191_v39 }
   0xd   :  { %890 = vmatpush3.msra.mxu0 %v1142_v22  ;;  %905 = vmatprep.subr.mxu1 %v226_v45  ;;  %v1221_v53 = vand.u32 4294901760, %v1194_v40  ;;  %v1224_v54 = vsub.f32 %v72_v24, %v1182_v36  ;;  %v177_v56 = vand.u32 4294901760, %v1197_v41  ;;  %v90_v57 = vsel %vm22_vm0, %v1103_v7, 0 }
   0xe   :  { %891 = vmatprep.subr.mxu0 %v1144_v23  ;;  %906 = vmatpush3.msra.mxu1 %v226_v45  ;;  %v168_v55 = vsub.f32 %v1205_v44, %v167_v50  ;;  %v247_v58 = vand.u32 4294901760, %v246_v46  ;;  %v260_v59 = vsub.f32 %v1180_v35, %v1211_v47  ;;  %v1239_v61 = vand.u32 4294901760, %v87_v48 }
   0xf   :  { %892 = vmatpush3.msra.mxu0 %v1144_v23  ;;  %907 = vmatprep.subr.mxu1 %v233_v49  ;;  %v1237_v60 = vand.u32 4294901760, %v1224_v54  ;;  %v178_v62 = vsub.f32 %v1197_v41, %v177_v56  ;;  %v254_v63 = vand.u32 4294901760, %v253_v52  ;;  %v267_v3 = vsub.f32 %v1194_v40, %v1221_v53 }
  0x10   :  { %893 = vmatprep.subr.mxu0 %v1158_v28  ;;  %908 = vmatpush3.msra.mxu1 %v233_v49  ;;  %v169_v4 = vand.u32 4294901760, %v168_v55  ;;  %v1248_v5 = vand.u32 4294901760, %v90_v57  ;;  %v261_v6 = vand.u32 4294901760, %v260_v59  ;;  %v1255_v11 = vsub.f32 %v87_v48, %v1239_v61 }
  0x11   :  { %894 = vmatpush3.msra.mxu0 %v1158_v28  ;;  %909 = vmatprep.subr.mxu1 %v240_v51  ;;  %v274_v9 = vsub.f32 %v1224_v54, %v1237_v60  ;;  %v179_v10 = vand.u32 4294901760, %v178_v62  ;;  %v268_v12 = vand.u32 4294901760, %v267_v3  ;;  %vm788_vm1 = vcmask 261120  }
  0x12   :  { %895 = vmatprep.subr.mxu0 %v1170_v32  ;;  %910 = vmatpush3.msra.mxu1 %v240_v51  ;;  %v1259_v14 = vsub.f32 %v90_v57, %v1248_v5  ;;  %v187_v16 = vand.u32 4294901760, %v1255_v11 }
  0x13   :  { %896 = vmatpush3.msra.mxu0 %v1170_v32  ;;  %911 = vmatprep.subr.mxu1 %v247_v58  ;;  %v275_v15 = vand.u32 4294901760, %v274_v9 }
  0x14   :  { %897 = vmatprep.subr.mxu0 %v1182_v36  ;;  %912 = vmatpush3.msra.mxu1 %v247_v58  ;;  %v197_v19 = vand.u32 4294901760, %v1259_v14  ;;  %v188_v20 = vsub.f32 %v1255_v11, %v187_v16 }
  0x15   :  { %898 = vmatpush3.msra.mxu0 %v1182_v36  ;;  %913 = vmatprep.subr.mxu1 %v254_v63 }
  0x16   :  { %899 = vmatprep.mubr.f32.mxu0 %v169_v4  ;;  %914 = vmatpush3.msra.mxu1 %v254_v63  ;;  %v189_v24 = vand.u32 4294901760, %v188_v20 }
  0x17   :  { %927 = vmatprep.subr.mxu0 %v1140_v21  ;;  %915 = vmatprep.subr.mxu1 %v261_v6 }
  0x18   :  { %900 = vmatmul.mubr.f32.vlgmr.msra.gmra.mxu0 %v179_v10  ;;  %916 = vmatpush3.msra.mxu1 %v261_v6 }
  0x19   :  { %928 = vmatpush3.msra.mxu0 %v1140_v21  ;;  %917 = vmatprep.subr.mxu1 %v268_v12  ;;  %v198_v21 = vsub.f32 %v1259_v14, %v197_v19 }
  0x1a   :  { %929 = vmatprep.subr.mxu0 %v1153_v26  ;;  %918 = vmatpush3.msra.mxu1 %v268_v12 }
  0x1b   :  { %930 = vmatpush3.msra.mxu0 %v1153_v26  ;;  %919 = vmatprep.subr.mxu1 %v275_v15  ;;  %v199_v26 = vand.u32 4294901760, %v198_v21 }
  0x1c   :  { %931 = vmatprep.subr.mxu0 %v1156_v27  ;;  %920 = vmatpush3.msra.mxu1 %v275_v15 }
  0x1d   :  { %932 = vmatpush3.msra.mxu0 %v1156_v27  ;;  %949 = vmatprep.subr.mxu1 %v1117_v13 }
  0x1e   :  { %922 = vmatmul.mubr.f32.vlgmr.msra.gmra.mxu1 %v1149_v25  ;;  %933 = vmatprep.subr.mxu0 %v1165_v30 }
  0x1f   :  { %950 = vmatpush3.msra.mxu1 %v1117_v13  ;;  %934 = vmatpush3.msra.mxu0 %v1165_v30 }
  0x20   :  { %951 = vmatprep.subr.mxu1 %v1127_v17  ;;  %935 = vmatprep.subr.mxu0 %v1168_v31 }
  0x21   :  { %952 = vmatpush3.msra.mxu1 %v1127_v17  ;;  %936 = vmatpush3.msra.mxu0 %v1168_v31 }
  0x22   :  { %953 = vmatprep.subr.mxu1 %v1129_v18  ;;  %937 = vmatprep.subr.mxu0 %v1180_v35 }
  0x23   :  { %954 = vmatpush3.msra.mxu1 %v1129_v18  ;;  %938 = vmatpush3.msra.mxu0 %v1180_v35 }
  0x24   :  { %955 = vmatprep.subr.mxu1 %v1142_v22  ;;  %902 = vmatprep.mubr.f32.mxu0 %v189_v24 }
  0x25   :  { %956 = vmatpush3.msra.mxu1 %v1142_v22  ;;  %939 = vmatprep.subr.mxu0 %v1194_v40 }
  0x26   :  { %957 = vmatprep.subr.mxu1 %v1144_v23  ;;  %903 = vmatmul.mubr.f32.gmra.mxu0 %v199_v26 }
  0x27   :  { %958 = vmatpush3.msra.mxu1 %v1144_v23  ;;  %940 = vmatpush3.msra.mxu0 %v1194_v40 }
  0x28   :  { %959 = vmatprep.subr.mxu1 %v1158_v28  ;;  %924 = vmatprep.mubr.f32.mxu1 %v1239_v61 }
  0x29   :  { %960 = vmatpush3.msra.mxu1 %v1158_v28  ;;  %941 = vmatprep.subr.mxu0 %v1224_v54 }
  0x2a   :  { %961 = vmatprep.subr.mxu1 %v1170_v32  ;;  %925 = vmatmul.mubr.f32.gmra.mxu1 %v1248_v5 }
  0x2b   :  { %942 = vmatpush3.msra.mxu0 %v1224_v54  ;;  %962 = vmatpush3.msra.mxu1 %v1170_v32 }
  0x2c   :  { %943 = vmatprep.mubr.f32.mxu0 %v1205_v44  ;;  %963 = vmatprep.subr.mxu1 %v1182_v36 }
  0x2d   :  { %971 = vmatprep.subr.mxu0 %v1162_v29  ;;  %944 = vmatmul.mubr.f32.vlgmr.msra.gmra.mxu0 %v1197_v41 }
  0x2e   :  { %964 = vmatpush3.msra.mxu1 %v1182_v36  ;;  %972 = vmatpush3.msra.mxu0 %v1162_v29 }
  0x2f   :  { %965 = vmatprep.mubr.f32.mxu1 %v167_v50  ;;  %973 = vmatprep.subr.mxu0 %v1174_v33 }
  0x30   :  { %993 = vmatprep.subr.mxu1 %v1117_v13  ;;  %966 = vmatmul.mubr.f32.vlgmr.msra.gmra.mxu1 %v177_v56 }
  0x31   :  { %974 = vmatpush3.msra.mxu0 %v1174_v33  ;;  %994 = vmatpush3.msra.mxu1 %v1117_v13 }
  0x32   :  { %975 = vmatprep.subr.mxu0 %v1177_v34  ;;  %995 = vmatprep.subr.mxu1 %v1127_v17 }
  0x33   :  { %976 = vmatpush3.msra.mxu0 %v1177_v34  ;;  %996 = vmatpush3.msra.mxu1 %v1127_v17 }
  0x34   :  { %977 = vmatprep.subr.mxu0 %v1188_v38  ;;  %997 = vmatprep.subr.mxu1 %v1129_v18 }
  0x35   :  { %978 = vmatpush3.msra.mxu0 %v1188_v38  ;;  %998 = vmatpush3.msra.mxu1 %v1129_v18 }
  0x36   :  { %979 = vmatprep.subr.mxu0 %v1191_v39  ;;  %999 = vmatprep.subr.mxu1 %v1142_v22 }
  0x37   :  { %980 = vmatpush3.msra.mxu0 %v1191_v39  ;;  %1000 = vmatpush3.msra.mxu1 %v1142_v22 }
  0x38   :  { %981 = vmatprep.subr.mxu0 %v1211_v47  ;;  %1001 = vmatprep.subr.mxu1 %v1144_v23 }
  0x39   :  { %946 = vmatprep.mubr.f32.mxu0 %v1255_v11  ;;  %982 = vmatpush3.msra.mxu0 %v1211_v47 }
  0x3a   :  { %1002 = vmatpush3.msra.mxu1 %v1144_v23  ;;  %947 = vmatmul.mubr.f32.gmra.mxu0 %v1259_v14 }
  0x3b   :  { %983 = vmatprep.subr.mxu0 %v1221_v53  ;;  %1003 = vmatprep.subr.mxu1 %v1158_v28 }
  0x3c   :  { %968 = vmatprep.mubr.f32.mxu1 %v187_v16  ;;  %984 = vmatpush3.msra.mxu0 %v1221_v53 }
  0x3d   :  { %1004 = vmatpush3.msra.mxu1 %v1158_v28  ;;  %985 = vmatprep.subr.mxu0 %v1237_v60 }
  0x3e   :  { %969 = vmatmul.mubr.f32.gmra.mxu1 %v197_v19  ;;  %1005 = vmatprep.subr.mxu1 %v1170_v32 }
  0x3f   :  { %986 = vmatpush3.msra.mxu0 %v1237_v60  ;;  %987 = vmatprep.mubr.f32.mxu0 %v1105_v8 }
  0x40   :  { %1006 = vmatpush3.msra.mxu1 %v1170_v32  ;;  %988 = vmatmul.mubr.f32.vlgmr.msra.gmra.mxu0 %v1149_v25 }
  0x41   :  { %1007 = vmatprep.subr.mxu1 %v1182_v36  ;;  %1009 = vmatprep.mubr.f32.mxu1 %v1105_v8 }
  0x42   :  { %1008 = vmatpush3.msra.mxu1 %v1182_v36  ;;  %990 = vmatprep.mubr.f32.mxu0 %v1239_v61 }
  0x43   :  { %1010 = vmatmul.mubr.f32.vlgmr.msra.gmra.mxu1 %v1149_v25 }
  0x44   :  { %1012 = vmatprep.mubr.f32.mxu1 %v1239_v61  ;;  %991 = vmatmul.mubr.f32.gmra.mxu0 %v1248_v5 }
  0x47   :  { %1013 = vmatmul.mubr.f32.gmra.mxu1 %v1248_v5 }
  0x8c   :  { %v25_v13 = vpop.xlane.xlu0 %24  ;;  %v31_v17 = vpop.xlane.xlu1 %30 }
  0x8d   :  { %v1356_v18 = vmul.f32 0.015625, %v25_v13  ;;  %v1358_v22 = vmul.f32 0.015625, %v31_v17 }
  0x8f   :  { %v40_v23 = vsub.f32 %v1079_v0, %v1356_v18  ;;  %v42_v8 = vsub.f32 %v1084_v1, %v1358_v22 }
  0x90   :  { %v28_v25 = vpop.xlane.xlu0 %27  ;;  %v34_v28 = vpop.xlane.xlu1 %33 }
  0x91   :  { %v1364_v27 = vmul.f32 0.015625, %v28_v25  ;;  %v44_v29 = vmul.f32 %v40_v23, %v40_v23  ;;  %v46_v30 = vmul.f32 %v42_v8, %v42_v8  ;;  %v1366_v31 = vmul.f32 0.015625, %v34_v28  ;;  %v809_v8 = vld [vmem:[%s1395_s2] ss:$0 sm:$0xff]  ;;  %s1048_s2 = smov [#allocation2]  }
  0x93   :  { %v41_v32 = vsub.f32 %v1089_v2, %v1364_v27  ;;  %v48_v33 = vsel %vm22_vm0, %v44_v29, 0.0  ;;  %v43_v34 = vsub.f32 %v1103_v7, %v1366_v31  ;;  %v54_v0 = vsel %vm22_vm0, %v46_v30, 0.0 }
  0x94   :  { %49 = vadd.xlane.f32.xlu0 %v48_v33 }
  0x95   :  { %v45_v1 = vmul.f32 %v41_v32, %v41_v32  ;;  %v47_v35 = vmul.f32 %v43_v34, %v43_v34  ;;  %v765_v32 = vmul.f32 %v809_v8, %v1356_v18 }
  0x97   :  { %v51_v36 = vsel %vm22_vm0, %v45_v1, 0.0  ;;  %v57_v37 = vsel %vm22_vm0, %v47_v35, 0.0 }
  0x98   :  { %55 = vadd.xlane.f32.xlu0 %v54_v0  ;;  %52 = vadd.xlane.f32.xlu1 %v51_v36 }
  0x9c   :  { %58 = vadd.xlane.f32.xlu1 %v57_v37  ;;  %v810_v37 = vld [vmem:[%s1396_s3] ss:$0 sm:$0xff]  ;;  %s798_s3 = sshll.u32 %s1048_s2, 4  ;;  %s799_s3 = int_to_ptr.vmem [resolvable:$true] %s798_s3 }
  0x9d   :  { %s1026_s15 = scalar_lea.vmem %s799_s3, 512  ;;  %p1031_p1 = scmp.lt.s32.totalorder %s799_s3, %s799_s3 }
  0x9e   :  { %p1027_p0 = scmp.ne.s32.totalorder %s799_s3, %s1026_s15  ;;  %p1032_p2 = scmp.lt.s32.totalorder %s1026_s15, %s1026_s15 }
  0xa0   :  { %p1033_p3 = por %p1032_p2, %p1031_p1 }
  0xa2   :  { %p1034_p4 = pnand %p1033_p3, %p1027_p0 }
  0xd8   :  { %v901_v38 = vpop.f32.mrf.mxu0 }
  0xda   :  { %v171_v39 = vpop.f32.mrf.mxu0 }
  0xde   :  { %v923_v2 = vpop.f32.mrf.mxu1 }
  0xdf   :  { %v319_v54 = vadd.f32 %v923_v2, %v901_v38  ;;  %v766_v38 = vmul.f32 %v809_v8, %v1364_v27  ;;  %v767_v2 = vmul.f32 %v809_v8, %v1358_v22 }
  0xe0   :  { %v312_v41 = vpop.f32.mrf.mxu1 }
  0xe1   :  { %v313_v51 = vadd.f32 %v312_v41, %v171_v39 }
  0xe6   :  { %v904_v40 = vpop.f32.mrf.mxu0 }
  0xe8   :  { %v191_v42 = vpop.f32.mrf.mxu0 }
  0xea   :  { %v926_v43 = vpop.f32.mrf.mxu1 }
  0xeb   :  { %v331_v62 = vadd.f32 %v926_v43, %v904_v40 }
  0xec   :  { %v324_v7 = vpop.f32.mrf.mxu1 }
  0xed   :  { %v945_v44 = vpop.f32.mrf.mxu0  ;;  %v325_v58 = vadd.f32 %v324_v7, %v191_v42 }
  0xee   :  { %v426_v63 = vadd.f32 %v945_v44, %v319_v54  ;;  %v768_v44 = vmul.f32 %v809_v8, %v1366_v31 }
  0xef   :  { %v418_v45 = vpop.f32.mrf.mxu0 }
  0xf0   :  { %v967_v46 = vpop.f32.mrf.mxu1  ;;  %v419_v56 = vadd.f32 %v418_v45, %v313_v51 }
  0xf1   :  { %v529_v16 = vadd.f32 %v967_v46, %v426_v63 }
  0xf2   :  { %v520_v48 = vpop.f32.mrf.mxu1 }
  0xf3   :  { %v521_v5 = vadd.f32 %v520_v48, %v419_v56 }
  0xfa   :  { %v948_v47 = vpop.f32.mrf.mxu0 }
  0xfb   :  { %v440_v20 = vadd.f32 %v948_v47, %v331_v62 }
  0xfc   :  { %v432_v49 = vpop.f32.mrf.mxu0 }
  0xfd   :  { %v433_v10 = vadd.f32 %v432_v49, %v325_v58 }
  0xfe   :  { %v970_v50 = vpop.f32.mrf.mxu1 }
  0xff   :  { %v545_v25 = vadd.f32 %v970_v50, %v440_v20 }
 0x100   :  { %v536_v52 = vpop.f32.mrf.mxu1  ;;  %v989_v53 = vpop.f32.mrf.mxu0 }
 0x101   :  { %v537_v26 = vadd.f32 %v536_v52, %v433_v10  ;;  %v646_v28 = vadd.f32 %v989_v53, %v529_v16 }
 0x102   :  { %v639_v59 = vpop.f32.mrf.mxu0 }
 0x103   :  { %v1011_v60 = vpop.f32.mrf.mxu1  ;;  %v640_v21 = vadd.f32 %v639_v59, %v521_v5 }
 0x104   :  { %v992_v11 = vpop.f32.mrf.mxu0  ;;  %v743_v34 = vadd.f32 %v1011_v60, %v646_v28 }
 0x105   :  { %v736_v12 = vpop.f32.mrf.mxu1  ;;  %v658_v0 = vadd.f32 %v992_v11, %v545_v25 }
 0x106   :  { %v651_v13 = vpop.f32.mrf.mxu0  ;;  %v737_v29 = vadd.f32 %v736_v12, %v640_v21  ;;  %v770_v40 = vsub.f32 %v743_v34, %v766_v38 }
 0x107   :  { %v1014_v17 = vpop.f32.mrf.mxu1  ;;  %v652_v30 = vadd.f32 %v651_v13, %v537_v26 }
 0x108   :  { %v769_v1 = vsub.f32 %v737_v29, %v765_v32  ;;  %v755_v41 = vadd.f32 %v1014_v17, %v658_v0 }
 0x109   :  { %v748_v33 = vpop.f32.mrf.mxu1 }
 0x10a   :  { %v749_v36 = vadd.f32 %v748_v33, %v652_v30  ;;  %v772_v47 = vsub.f32 %v755_v41, %v768_v44 }
 0x10c   :  { %v771_v43 = vsub.f32 %v749_v36, %v767_v2 }
 0x11d   :  { %v50_v55 = vpop.xlane.xlu0 %49 }
 0x11e   :  { %v60_v57 = vmul.f32 0.015625, %v50_v55 }
 0x120   :  { %v64_v61 = vadd.f32 1e-05, %v60_v57 }
 0x121   :  { %v53_v3 = vpop.xlane.xlu1 %52  ;;  %v56_v4 = vpop.xlane.xlu0 %55 }
 0x122   :  { %1018 = vrsqrt.f32 %v64_v61  ;;  %v61_v6 = vmul.f32 0.015625, %v53_v3  ;;  %v62_v9 = vmul.f32 0.015625, %v56_v4 }
 0x124   :  { %v65_v14 = vadd.f32 1e-05, %v61_v6  ;;  %v66_v15 = vadd.f32 1e-05, %v62_v9 }
 0x125   :  { %v59_v19 = vpop.xlane.xlu1 %58 }
 0x126   :  { %1020 = vrsqrt.f32 %v65_v14  ;;  %v63_v24 = vmul.f32 0.015625, %v59_v19 }
 0x127   :  { %1022 = vrsqrt.f32 %v66_v15 }
 0x128   :  { %v67_v23 = vadd.f32 1e-05, %v63_v24 }
 0x12a   :  { %1024 = vrsqrt.f32 %v67_v23 }
 0x12f   :  { %v1019_v35 = vpop.eup %1018 }
 0x130   :  { %v773_v39 = vmul.f32 %v1019_v35, %v769_v1 }
 0x132   :  { %v784_v42 = vadd.f32 %v810_v37, %v773_v39 }
 0x133   :  { %v1021_v18 = vpop.eup %1020 }
 0x134   :  { %v1023_v7 = vpop.eup %1022  ;;  %v774_v45 = vmul.f32 %v1021_v18, %v770_v40  ;;  %789 = vst.msk [vmem:[#allocation2] sm:$0xff] %vm788_vm1, %v784_v42 }
 0x135   :  { %v775_v46 = vmul.f32 %v1023_v7, %v771_v43 }
 0x136   :  { %v785_v48 = vadd.f32 %v810_v37, %v774_v45 }
 0x137   :  { %v1025_v49 = vpop.eup %1024  ;;  %v786_v27 = vadd.f32 %v810_v37, %v775_v46 }
 0x138   :  { %v776_v22 = vmul.f32 %v1025_v49, %v772_v47  ;;  %790 = vst.msk [vmem:[#allocation2 + $0x8] sm:$0xff] %vm788_vm1, %v785_v48 }
 0x139   :  { %791 = vst.msk [vmem:[#allocation2 + $0x10] sm:$0xff] %vm788_vm1, %v786_v27 }
 0x13a   :  { %v787_v50 = vadd.f32 %v810_v37, %v776_v22 }
 0x13c   :  { %792 = vst.msk [vmem:[#allocation2 + $0x18] sm:$0xff] %vm788_vm1, %v787_v50 }
 0x13d   :  { %1037 = shalt.err (!%p1034_p4)
}
 0x13e   :  { %s1049_s16 = smov 128   ;;  %s1050_s17 = smov 8  }
 0x13f   :  { %804 = dma.vmem_to_hbm [thread:$0]  %s799_s3, 512, %s1397_s4, [#allocation3], %s1049_s16, %s1049_s16, %s1050_s17  }
 0x140   :  { %1046 = dma.done.wait [#allocation3], 512  }
 0x141   :  { %1047 = vsyncadd [#allocation3], 4294966784 }
 0x142   :  { %808 = vsyncpa [#allocation3], 1 }

// kernel: tpu_custom_call.1
= control target key start
LH: loop header
LB: loop body
LE: loop exit
PB: predicated region body
PF: predicated region fallthrough
CT: control target
= control target key end

     0   :  { %vm22_vm0 = vcmask 523264   ;;  %s1393_s0 = inlined_call_operand.vmem [shape: f32[32,64], index: 0, kind: input, shape index: {}]   ;;  %s1394_s1 = inlined_call_operand.vmem [shape: f32[64,32], index: 1, kind: input, shape index: {}]   ;;  %s1395_s2 = inlined_call_operand.vmem [shape: f32[1,32], index: 2, kind: input, shape index: {}]   ;;  %s1396_s3 = inlined_call_operand.vmem [shape: f32[1,32], index: 3, kind: input, shape index: {}]   ;;  %s1397_s4 = inlined_call_operand.hbm [shape: f32[32,32], index: 4, kind: output, shape index: {}]  }
   0x1   :  { %v1079_v0 = vld [vmem:[%s1393_s0] sm:$0xff]  ;;  %v1084_v1 = vld [vmem:[%s1393_s0 + $0x10] sm:$0xff]  ;;  %v1089_v2 = vld [vmem:[%s1393_s0 + $0x8] sm:$0xff] }
   0x2   :  { %v23_v3 = vsel %vm22_vm0, %v1079_v0, 0.0  ;;  %v81_v4 = vsel %vm22_vm0, %v1079_v0, 0  ;;  %v29_v5 = vsel %vm22_vm0, %v1084_v1, 0.0  ;;  %v79_v6 = vld [vmem:[%s1394_s1 + $0x38] sm:$0xff]  ;;  %v78_v9 = vld [vmem:[%s1394_s1 + $0x30] sm:$0xff]  ;;  %v77_v10 = vld [vmem:[%s1394_s1 + $0x28] sm:$0xff] }
   0x3   :  { %v1103_v7 = vld [vmem:[%s1393_s0 + $0x18] sm:$0xff]  ;;  %v1105_v8 = vand.u32 4294901760, %v81_v4  ;;  %24 = vadd.xlane.f32.xlu0 %v23_v3  ;;  %30 = vadd.xlane.f32.xlu1 %v29_v5  ;;  %v26_v11 = vsel %vm22_vm0, %v1089_v2, 0.0  ;;  %v84_v12 = vsel %vm22_vm0, %v1089_v2, 0  ;;  %v1117_v13 = vand.u32 4294901760, %v79_v6  ;;  %v76_v14 = vld [vmem:[%s1394_s1 + $0x20] sm:$0xff] }
   0x4   :  { %v75_v15 = vld [vmem:[%s1394_s1 + $0x18] sm:$0xff]  ;;  %v32_v16 = vsel %vm22_vm0, %v1103_v7, 0.0  ;;  %v1127_v17 = vand.u32 4294901760, %v78_v9  ;;  %v1129_v18 = vand.u32 4294901760, %v77_v10  ;;  %v74_v19 = vld [vmem:[%s1394_s1 + $0x10] sm:$0xff]  ;;  %v73_v20 = vld [vmem:[%s1394_s1 + $0x8] sm:$0xff] }
   0x5   :  { %921 = vmatprep.mubr.f32.mxu1 %v1105_v8  ;;  %883 = vmatprep.subr.mxu0 %v1117_v13  ;;  %v1140_v21 = vsub.f32 %v79_v6, %v1117_v13  ;;  %v1142_v22 = vand.u32 4294901760, %v76_v14  ;;  %v1144_v23 = vand.u32 4294901760, %v75_v15  ;;  %v72_v24 = vld [vmem:[%s1394_s1] sm:$0xff] }
   0x6   :  { %9 = vsyncpa [#allocation3], 0  ;;  %v1149_v25 = vand.u32 4294901760, %v84_v12  ;;  %884 = vmatpush3.msra.mxu0 %v1117_v13  ;;  %v1153_v26 = vsub.f32 %v78_v9, %v1127_v17  ;;  %v1156_v27 = vsub.f32 %v77_v10, %v1129_v18  ;;  %v1158_v28 = vand.u32 4294901760, %v74_v19 }
   0x7   :  { %27 = vadd.xlane.f32.xlu0 %v26_v11  ;;  %33 = vadd.xlane.f32.xlu1 %v32_v16  ;;  %v1162_v29 = vand.u32 4294901760, %v1140_v21  ;;  %v1165_v30 = vsub.f32 %v76_v14, %v1142_v22  ;;  %v1168_v31 = vsub.f32 %v75_v15, %v1144_v23  ;;  %v1170_v32 = vand.u32 4294901760, %v73_v20 }
   0x8   :  { %885 = vmatprep.subr.mxu0 %v1127_v17  ;;  %v1174_v33 = vand.u32 4294901760, %v1153_v26  ;;  %v1177_v34 = vand.u32 4294901760, %v1156_v27  ;;  %v1180_v35 = vsub.f32 %v74_v19, %v1158_v28  ;;  %v1182_v36 = vand.u32 4294901760, %v72_v24 }
   0x9   :  { %886 = vmatpush3.msra.mxu0 %v1127_v17  ;;  %v225_v37 = vsub.f32 %v1140_v21, %v1162_v29  ;;  %v1188_v38 = vand.u32 4294901760, %v1165_v30  ;;  %v1191_v39 = vand.u32 4294901760, %v1168_v31  ;;  %v1194_v40 = vsub.f32 %v73_v20, %v1170_v32 }
   0xa   :  { %887 = vmatprep.subr.mxu0 %v1129_v18  ;;  %v1197_v41 = vsub.f32 %v84_v12, %v1149_v25  ;;  %v232_v42 = vsub.f32 %v1153_v26, %v1174_v33  ;;  %v239_v43 = vsub.f32 %v1156_v27, %v1177_v34  ;;  %v1205_v44 = vsub.f32 %v81_v4, %v1105_v8 }
   0xb   :  { %888 = vmatpush3.msra.mxu0 %v1129_v18  ;;  %v226_v45 = vand.u32 4294901760, %v225_v37  ;;  %v246_v46 = vsub.f32 %v1165_v30, %v1188_v38  ;;  %v1211_v47 = vand.u32 4294901760, %v1180_v35  ;;  %v87_v48 = vsel %vm22_vm0, %v1084_v1, 0 }
   0xc   :  { %889 = vmatprep.subr.mxu0 %v1142_v22  ;;  %v233_v49 = vand.u32 4294901760, %v232_v42  ;;  %v167_v50 = vand.u32 4294901760, %v1205_v44  ;;  %v240_v51 = vand.u32 4294901760, %v239_v43  ;;  %v253_v52 = vsub.f32 %v1168_v31, %v1191_v39 }
   0xd   :  { %890 = vmatpush3.msra.mxu0 %v1142_v22  ;;  %905 = vmatprep.subr.mxu1 %v226_v45  ;;  %v1221_v53 = vand.u32 4294901760, %v1194_v40  ;;  %v1224_v54 = vsub.f32 %v72_v24, %v1182_v36  ;;  %v177_v56 = vand.u32 4294901760, %v1197_v41  ;;  %v90_v57 = vsel %vm22_vm0, %v1103_v7, 0 }
   0xe   :  { %891 = vmatprep.subr.mxu0 %v1144_v23  ;;  %906 = vmatpush3.msra.mxu1 %v226_v45  ;;  %v168_v55 = vsub.f32 %v1205_v44, %v167_v50  ;;  %v247_v58 = vand.u32 4294901760, %v246_v46  ;;  %v260_v59 = vsub.f32 %v1180_v35, %v1211_v47  ;;  %v1239_v61 = vand.u32 4294901760, %v87_v48 }
   0xf   :  { %892 = vmatpush3.msra.mxu0 %v1144_v23  ;;  %907 = vmatprep.subr.mxu1 %v233_v49  ;;  %v1237_v60 = vand.u32 4294901760, %v1224_v54  ;;  %v178_v62 = vsub.f32 %v1197_v41, %v177_v56  ;;  %v254_v63 = vand.u32 4294901760, %v253_v52  ;;  %v267_v3 = vsub.f32 %v1194_v40, %v1221_v53 }
  0x10   :  { %893 = vmatprep.subr.mxu0 %v1158_v28  ;;  %908 = vmatpush3.msra.mxu1 %v233_v49  ;;  %v169_v4 = vand.u32 4294901760, %v168_v55  ;;  %v1248_v5 = vand.u32 4294901760, %v90_v57  ;;  %v261_v6 = vand.u32 4294901760, %v260_v59  ;;  %v1255_v11 = vsub.f32 %v87_v48, %v1239_v61 }
  0x11   :  { %894 = vmatpush3.msra.mxu0 %v1158_v28  ;;  %909 = vmatprep.subr.mxu1 %v240_v51  ;;  %v274_v9 = vsub.f32 %v1224_v54, %v1237_v60  ;;  %v179_v10 = vand.u32 4294901760, %v178_v62  ;;  %v268_v12 = vand.u32 4294901760, %v267_v3  ;;  %vm788_vm1 = vcmask 261120  }
  0x12   :  { %895 = vmatprep.subr.mxu0 %v1170_v32  ;;  %910 = vmatpush3.msra.mxu1 %v240_v51  ;;  %v1259_v14 = vsub.f32 %v90_v57, %v1248_v5  ;;  %v187_v16 = vand.u32 4294901760, %v1255_v11 }
  0x13   :  { %896 = vmatpush3.msra.mxu0 %v1170_v32  ;;  %911 = vmatprep.subr.mxu1 %v247_v58  ;;  %v275_v15 = vand.u32 4294901760, %v274_v9 }
  0x14   :  { %897 = vmatprep.subr.mxu0 %v1182_v36  ;;  %912 = vmatpush3.msra.mxu1 %v247_v58  ;;  %v197_v19 = vand.u32 4294901760, %v1259_v14  ;;  %v188_v20 = vsub.f32 %v1255_v11, %v187_v16 }
  0x15   :  { %898 = vmatpush3.msra.mxu0 %v1182_v36  ;;  %913 = vmatprep.subr.mxu1 %v254_v63 }
  0x16   :  { %899 = vmatprep.mubr.f32.mxu0 %v169_v4  ;;  %914 = vmatpush3.msra.mxu1 %v254_v63  ;;  %v189_v24 = vand.u32 4294901760, %v188_v20 }
  0x17   :  { %927 = vmatprep.subr.mxu0 %v1140_v21  ;;  %915 = vmatprep.subr.mxu1 %v261_v6 }
  0x18   :  { %900 = vmatmul.mubr.f32.vlgmr.msra.gmra.mxu0 %v179_v10  ;;  %916 = vmatpush3.msra.mxu1 %v261_v6 }
  0x19   :  { %928 = vmatpush3.msra.mxu0 %v1140_v21  ;;  %917 = vmatprep.subr.mxu1 %v268_v12  ;;  %v198_v21 = vsub.f32 %v1259_v14, %v197_v19 }
  0x1a   :  { %929 = vmatprep.subr.mxu0 %v1153_v26  ;;  %918 = vmatpush3.msra.mxu1 %v268_v12 }
  0x1b   :  { %930 = vmatpush3.msra.mxu0 %v1153_v26  ;;  %919 = vmatprep.subr.mxu1 %v275_v15  ;;  %v199_v26 = vand.u32 4294901760, %v198_v21 }
  0x1c   :  { %931 = vmatprep.subr.mxu0 %v1156_v27  ;;  %920 = vmatpush3.msra.mxu1 %v275_v15 }
  0x1d   :  { %932 = vmatpush3.msra.mxu0 %v1156_v27  ;;  %949 = vmatprep.subr.mxu1 %v1117_v13 }
  0x1e   :  { %922 = vmatmul.mubr.f32.vlgmr.msra.gmra.mxu1 %v1149_v25  ;;  %933 = vmatprep.subr.mxu0 %v1165_v30 }
  0x1f   :  { %950 = vmatpush3.msra.mxu1 %v1117_v13  ;;  %934 = vmatpush3.msra.mxu0 %v1165_v30 }
  0x20   :  { %951 = vmatprep.subr.mxu1 %v1127_v17  ;;  %935 = vmatprep.subr.mxu0 %v1168_v31 }
  0x21   :  { %952 = vmatpush3.msra.mxu1 %v1127_v17  ;;  %936 = vmatpush3.msra.mxu0 %v1168_v31 }
  0x22   :  { %953 = vmatprep.subr.mxu1 %v1129_v18  ;;  %937 = vmatprep.subr.mxu0 %v1180_v35 }
  0x23   :  { %954 = vmatpush3.msra.mxu1 %v1129_v18  ;;  %938 = vmatpush3.msra.mxu0 %v1180_v35 }
  0x24   :  { %955 = vmatprep.subr.mxu1 %v1142_v22  ;;  %902 = vmatprep.mubr.f32.mxu0 %v189_v24 }
  0x25   :  { %956 = vmatpush3.msra.mxu1 %v1142_v22  ;;  %939 = vmatprep.subr.mxu0 %v1194_v40 }
  0x26   :  { %957 = vmatprep.subr.mxu1 %v1144_v23  ;;  %903 = vmatmul.mubr.f32.gmra.mxu0 %v199_v26 }
  0x27   :  { %958 = vmatpush3.msra.mxu1 %v1144_v23  ;;  %940 = vmatpush3.msra.mxu0 %v1194_v40 }
  0x28   :  { %959 = vmatprep.subr.mxu1 %v1158_v28  ;;  %924 = vmatprep.mubr.f32.mxu1 %v1239_v61 }
  0x29   :  { %960 = vmatpush3.msra.mxu1 %v1158_v28  ;;  %941 = vmatprep.subr.mxu0 %v1224_v54 }
  0x2a   :  { %961 = vmatprep.subr.mxu1 %v1170_v32  ;;  %925 = vmatmul.mubr.f32.gmra.mxu1 %v1248_v5 }
  0x2b   :  { %942 = vmatpush3.msra.mxu0 %v1224_v54  ;;  %962 = vmatpush3.msra.mxu1 %v1170_v32 }
  0x2c   :  { %943 = vmatprep.mubr.f32.mxu0 %v1205_v44  ;;  %963 = vmatprep.subr.mxu1 %v1182_v36 }
  0x2d   :  { %971 = vmatprep.subr.mxu0 %v1162_v29  ;;  %944 = vmatmul.mubr.f32.vlgmr.msra.gmra.mxu0 %v1197_v41 }
  0x2e   :  { %964 = vmatpush3.msra.mxu1 %v1182_v36  ;;  %972 = vmatpush3.msra.mxu0 %v1162_v29 }
  0x2f   :  { %965 = vmatprep.mubr.f32.mxu1 %v167_v50  ;;  %973 = vmatprep.subr.mxu0 %v1174_v33 }
  0x30   :  { %993 = vmatprep.subr.mxu1 %v1117_v13  ;;  %966 = vmatmul.mubr.f32.vlgmr.msra.gmra.mxu1 %v177_v56 }
  0x31   :  { %974 = vmatpush3.msra.mxu0 %v1174_v33  ;;  %994 = vmatpush3.msra.mxu1 %v1117_v13 }
  0x32   :  { %975 = vmatprep.subr.mxu0 %v1177_v34  ;;  %995 = vmatprep.subr.mxu1 %v1127_v17 }
  0x33   :  { %976 = vmatpush3.msra.mxu0 %v1177_v34  ;;  %996 = vmatpush3.msra.mxu1 %v1127_v17 }
  0x34   :  { %977 = vmatprep.subr.mxu0 %v1188_v38  ;;  %997 = vmatprep.subr.mxu1 %v1129_v18 }
  0x35   :  { %978 = vmatpush3.msra.mxu0 %v1188_v38  ;;  %998 = vmatpush3.msra.mxu1 %v1129_v18 }
  0x36   :  { %979 = vmatprep.subr.mxu0 %v1191_v39  ;;  %999 = vmatprep.subr.mxu1 %v1142_v22 }
  0x37   :  { %980 = vmatpush3.msra.mxu0 %v1191_v39  ;;  %1000 = vmatpush3.msra.mxu1 %v1142_v22 }
  0x38   :  { %981 = vmatprep.subr.mxu0 %v1211_v47  ;;  %1001 = vmatprep.subr.mxu1 %v1144_v23 }
  0x39   :  { %946 = vmatprep.mubr.f32.mxu0 %v1255_v11  ;;  %982 = vmatpush3.msra.mxu0 %v1211_v47 }
  0x3a   :  { %1002 = vmatpush3.msra.mxu1 %v1144_v23  ;;  %947 = vmatmul.mubr.f32.gmra.mxu0 %v1259_v14 }
  0x3b   :  { %983 = vmatprep.subr.mxu0 %v1221_v53  ;;  %1003 = vmatprep.subr.mxu1 %v1158_v28 }
  0x3c   :  { %968 = vmatprep.mubr.f32.mxu1 %v187_v16  ;;  %984 = vmatpush3.msra.mxu0 %v1221_v53 }
  0x3d   :  { %1004 = vmatpush3.msra.mxu1 %v1158_v28  ;;  %985 = vmatprep.subr.mxu0 %v1237_v60 }
  0x3e   :  { %969 = vmatmul.mubr.f32.gmra.mxu1 %v197_v19  ;;  %1005 = vmatprep.subr.mxu1 %v1170_v32 }
  0x3f   :  { %986 = vmatpush3.msra.mxu0 %v1237_v60  ;;  %987 = vmatprep.mubr.f32.mxu0 %v1105_v8 }
  0x40   :  { %1006 = vmatpush3.msra.mxu1 %v1170_v32  ;;  %988 = vmatmul.mubr.f32.vlgmr.msra.gmra.mxu0 %v1149_v25 }
  0x41   :  { %1007 = vmatprep.subr.mxu1 %v1182_v36  ;;  %1009 = vmatprep.mubr.f32.mxu1 %v1105_v8 }
  0x42   :  { %1008 = vmatpush3.msra.mxu1 %v1182_v36  ;;  %990 = vmatprep.mubr.f32.mxu0 %v1239_v61 }
  0x43   :  { %1010 = vmatmul.mubr.f32.vlgmr.msra.gmra.mxu1 %v1149_v25 }
  0x44   :  { %1012 = vmatprep.mubr.f32.mxu1 %v1239_v61  ;;  %991 = vmatmul.mubr.f32.gmra.mxu0 %v1248_v5 }
  0x47   :  { %1013 = vmatmul.mubr.f32.gmra.mxu1 %v1248_v5 }
  0x8c   :  { %v25_v13 = vpop.xlane.xlu0 %24  ;;  %v31_v17 = vpop.xlane.xlu1 %30 }
  0x8d   :  { %v1356_v18 = vmul.f32 0.015625, %v25_v13  ;;  %v1358_v22 = vmul.f32 0.015625, %v31_v17 }
  0x8f   :  { %v40_v23 = vsub.f32 %v1079_v0, %v1356_v18  ;;  %v42_v8 = vsub.f32 %v1084_v1, %v1358_v22 }
  0x90   :  { %v28_v25 = vpop.xlane.xlu0 %27  ;;  %v34_v28 = vpop.xlane.xlu1 %33 }
  0x91   :  { %v1364_v27 = vmul.f32 0.015625, %v28_v25  ;;  %v44_v29 = vmul.f32 %v40_v23, %v40_v23  ;;  %v46_v30 = vmul.f32 %v42_v8, %v42_v8  ;;  %v1366_v31 = vmul.f32 0.015625, %v34_v28  ;;  %v809_v8 = vld [vmem:[%s1395_s2] ss:$0 sm:$0xff]  ;;  %s1048_s2 = smov [#allocation2]  }
  0x93   :  { %v41_v32 = vsub.f32 %v1089_v2, %v1364_v27  ;;  %v48_v33 = vsel %vm22_vm0, %v44_v29, 0.0  ;;  %v43_v34 = vsub.f32 %v1103_v7, %v1366_v31  ;;  %v54_v0 = vsel %vm22_vm0, %v46_v30, 0.0 }
  0x94   :  { %49 = vadd.xlane.f32.xlu0 %v48_v33 }
  0x95   :  { %v45_v1 = vmul.f32 %v41_v32, %v41_v32  ;;  %v47_v35 = vmul.f32 %v43_v34, %v43_v34  ;;  %v765_v32 = vmul.f32 %v809_v8, %v1356_v18 }
  0x97   :  { %v51_v36 = vsel %vm22_vm0, %v45_v1, 0.0  ;;  %v57_v37 = vsel %vm22_vm0, %v47_v35, 0.0 }
  0x98   :  { %55 = vadd.xlane.f32.xlu0 %v54_v0  ;;  %52 = vadd.xlane.f32.xlu1 %v51_v36 }
  0x9c   :  { %58 = vadd.xlane.f32.xlu1 %v57_v37  ;;  %v810_v37 = vld [vmem:[%s1396_s3] ss:$0 sm:$0xff]  ;;  %s798_s3 = sshll.u32 %s1048_s2, 4  ;;  %s799_s3 = int_to_ptr.vmem [resolvable:$true] %s798_s3 }
  0x9d   :  { %s1026_s15 = scalar_lea.vmem %s799_s3, 512  ;;  %p1031_p1 = scmp.lt.s32.totalorder %s799_s3, %s799_s3 }
  0x9e   :  { %p1027_p0 = scmp.ne.s32.totalorder %s799_s3, %s1026_s15  ;;  %p1032_p2 = scmp.lt.s32.totalorder %s1026_s15, %s1026_s15 }
  0xa0   :  { %p1033_p3 = por %p1032_p2, %p1031_p1 }
  0xa2   :  { %p1034_p4 = pnand %p1033_p3, %p1027_p0 }
  0xd8   :  { %v901_v38 = vpop.f32.mrf.mxu0 }
  0xda   :  { %v171_v39 = vpop.f32.mrf.mxu0 }
  0xde   :  { %v923_v2 = vpop.f32.mrf.mxu1 }
  0xdf   :  { %v319_v54 = vadd.f32 %v923_v2, %v901_v38  ;;  %v766_v38 = vmul.f32 %v809_v8, %v1364_v27  ;;  %v767_v2 = vmul.f32 %v809_v8, %v1358_v22 }
  0xe0   :  { %v312_v41 = vpop.f32.mrf.mxu1 }
  0xe1   :  { %v313_v51 = vadd.f32 %v312_v41, %v171_v39 }
  0xe6   :  { %v904_v40 = vpop.f32.mrf.mxu0 }
  0xe8   :  { %v191_v42 = vpop.f32.mrf.mxu0 }
  0xea   :  { %v926_v43 = vpop.f32.mrf.mxu1 }
  0xeb   :  { %v331_v62 = vadd.f32 %v926_v43, %v904_v40 }
  0xec   :  { %v324_v7 = vpop.f32.mrf.mxu1 }
  0xed   :  { %v945_v44 = vpop.f32.mrf.mxu0  ;;  %v325_v58 = vadd.f32 %v324_v7, %v191_v42 }
  0xee   :  { %v426_v63 = vadd.f32 %v945_v44, %v319_v54  ;;  %v768_v44 = vmul.f32 %v809_v8, %v1366_v31 }
  0xef   :  { %v418_v45 = vpop.f32.mrf.mxu0 }
  0xf0   :  { %v967_v46 = vpop.f32.mrf.mxu1  ;;  %v419_v56 = vadd.f32 %v418_v45, %v313_v51 }
  0xf1   :  { %v529_v16 = vadd.f32 %v967_v46, %v426_v63 }
  0xf2   :  { %v520_v48 = vpop.f32.mrf.mxu1 }
  0xf3   :  { %v521_v5 = vadd.f32 %v520_v48, %v419_v56 }
  0xfa   :  { %v948_v47 = vpop.f32.mrf.mxu0 }
  0xfb   :  { %v440_v20 = vadd.f32 %v948_v47, %v331_v62 }
  0xfc   :  { %v432_v49 = vpop.f32.mrf.mxu0 }
  0xfd   :  { %v433_v10 = vadd.f32 %v432_v49, %v325_v58 }
  0xfe   :  { %v970_v50 = vpop.f32.mrf.mxu1 }
  0xff   :  { %v545_v25 = vadd.f32 %v970_v50, %v440_v20 }
 0x100   :  { %v536_v52 = vpop.f32.mrf.mxu1  ;;  %v989_v53 = vpop.f32.mrf.mxu0 }
 0x101   :  { %v537_v26 = vadd.f32 %v536_v52, %v433_v10  ;;  %v646_v28 = vadd.f32 %v989_v53, %v529_v16 }
 0x102   :  { %v639_v59 = vpop.f32.mrf.mxu0 }
 0x103   :  { %v1011_v60 = vpop.f32.mrf.mxu1  ;;  %v640_v21 = vadd.f32 %v639_v59, %v521_v5 }
 0x104   :  { %v992_v11 = vpop.f32.mrf.mxu0  ;;  %v743_v34 = vadd.f32 %v1011_v60, %v646_v28 }
 0x105   :  { %v736_v12 = vpop.f32.mrf.mxu1  ;;  %v658_v0 = vadd.f32 %v992_v11, %v545_v25 }
 0x106   :  { %v651_v13 = vpop.f32.mrf.mxu0  ;;  %v737_v29 = vadd.f32 %v736_v12, %v640_v21  ;;  %v770_v40 = vsub.f32 %v743_v34, %v766_v38 }
 0x107   :  { %v1014_v17 = vpop.f32.mrf.mxu1  ;;  %v652_v30 = vadd.f32 %v651_v13, %v537_v26 }
 0x108   :  { %v769_v1 = vsub.f32 %v737_v29, %v765_v32  ;;  %v755_v41 = vadd.f32 %v1014_v17, %v658_v0 }
 0x109   :  { %v748_v33 = vpop.f32.mrf.mxu1 }
 0x10a   :  { %v749_v36 = vadd.f32 %v748_v33, %v652_v30  ;;  %v772_v47 = vsub.f32 %v755_v41, %v768_v44 }
 0x10c   :  { %v771_v43 = vsub.f32 %v749_v36, %v767_v2 }
 0x11d   :  { %v50_v55 = vpop.xlane.xlu0 %49 }
 0x11e   :  { %v60_v57 = vmul.f32 0.015625, %v50_v55 }
 0x120   :  { %v64_v61 = vadd.f32 1e-05, %v60_v57 }
 0x121   :  { %v53_v3 = vpop.xlane.xlu1 %52  ;;  %v56_v4 = vpop.xlane.xlu0 %55 }
 0x122   :  { %1018 = vrsqrt.f32 %v64_v61  ;;  %v61_v6 = vmul.f32 0.015625, %v53_v3  ;;  %v62_v9 = vmul.f32 0.015625, %v56_v4 }
 0x124   :  { %v65_v14 = vadd.f32 1e-05, %v61_v6  ;;  %v66_v15 = vadd.f32 1e-05, %v62_v9 }
 0x125   :  { %v59_v19 = vpop.xlane.xlu1 %58 }
 0x126   :  { %1020 = vrsqrt.f32 %v65_v14  ;;  %v63_v24 = vmul.f32 0.015625, %v59_v19 }
 0x127   :  { %1022 = vrsqrt.f32 %v66_v15 }
 0x128   :  { %v67_v23 = vadd.f32 1e-05, %v63_v24 }
 0x12a   :  { %1024 = vrsqrt.f32 %v67_v23 }
 0x12f   :  { %v1019_v35 = vpop.eup %1018 }
 0x130   :  { %v773_v39 = vmul.f32 %v1019_v35, %v769_v1 }
 0x132   :  { %v784_v42 = vadd.f32 %v810_v37, %v773_v39 }
 0x133   :  { %v1021_v18 = vpop.eup %1020 }
 0x134   :  { %v1023_v7 = vpop.eup %1022  ;;  %v774_v45 = vmul.f32 %v1021_v18, %v770_v40  ;;  %789 = vst.msk [vmem:[#allocation2] sm:$0xff] %vm788_vm1, %v784_v42 }
 0x135   :  { %v775_v46 = vmul.f32 %v1023_v7, %v771_v43 }
 0x136   :  { %v785_v48 = vadd.f32 %v810_v37, %v774_v45 }
 0x137   :  { %v1025_v49 = vpop.eup %1024  ;;  %v786_v27 = vadd.f32 %v810_v37, %v775_v46 }
 0x138   :  { %v776_v22 = vmul.f32 %v1025_v49, %v772_v47  ;;  %790 = vst.msk [vmem:[#allocation2 + $0x8] sm:$0xff] %vm788_vm1, %v785_v48 }
 0x139   :  { %791 = vst.msk [vmem:[#allocation2 + $0x10] sm:$0xff] %vm788_vm1, %v786_v27 }
 0x13a   :  { %v787_v50 = vadd.f32 %v810_v37, %v776_v22 }
 0x13c   :  { %792 = vst.msk [vmem:[#allocation2 + $0x18] sm:$0xff] %vm788_vm1, %v787_v50 }
 0x13d   :  { %1037 = shalt.err (!%p1034_p4)
}
 0x13e   :  { %s1049_s16 = smov 128   ;;  %s1050_s17 = smov 8  }
 0x13f   :  { %804 = dma.vmem_to_hbm [thread:$0]  %s799_s3, 512, %s1397_s4, [#allocation3], %s1049_s16, %s1049_s16, %s1050_s17  }
 0x140   :  { %1046 = dma.done.wait [#allocation3], 512  }
 0x141   :  { %1047 = vsyncadd [#allocation3], 4294966784 }
 0x142   :  { %808 = vsyncpa [#allocation3], 1 }

</bundles_post_ra>
